<compile_context>
chip_gen: v7x
topology: tpu7x:2x2x1
jax: 0.10.0
libtpu: 0.0.40
codegen_flags: <defaults>
</compile_context>

<pallas_src>
import functools
import math

import jax
import jax.numpy as jnp
from jax import lax
from jax.experimental import pallas as pl
from jax.experimental.pallas import tpu as pltpu


def dnn_kernel(x_ref, w1_ref, b1_ref, w2_ref, b2_ref, w3_ref, b3_ref, o_ref):
    x = x_ref[...]                                      # (tile_b, F) f32

    # fc1 + relu: (15, F) · (tile_b, F) contracted on F -> (15, tile_b)
    h1 = lax.dot_general(
        w1_ref[...], x,
        dimension_numbers=(((1,), (1,)), ((), ())),
        preferred_element_type=jnp.float32,
    ) + b1_ref[...]
    h1 = jnp.maximum(h1, 0.0)

    # fc2 + relu: (7, 15) @ (15, tile_b) -> (7, tile_b)
    h2 = lax.dot_general(
        w2_ref[...], h1,
        dimension_numbers=(((1,), (0,)), ((), ())),
        preferred_element_type=jnp.float32,
    ) + b2_ref[...]
    h2 = jnp.maximum(h2, 0.0)

    # fc3 + sigmoid: (1, 7) @ (7, tile_b) -> (1, tile_b); sigmoid as a single
    # EUP tanh (exact; VALU slots stay free).
    logits = lax.dot_general(
        w3_ref[...], h2,
        dimension_numbers=(((1,), (0,)), ((), ())),
        preferred_element_type=jnp.float32,
    ) + b3_ref[...]
    o_ref[...] = 0.5 * (jnp.tanh(0.5 * logits) + 1.0)


@functools.partial(jax.jit, static_argnames=("tile_b",))
def dnn_forward(x, w1, b1, w2, b2, w3, b3, *, tile_b=16384):
    """Forward pass. Weights use torch nn.Linear layout: w (out, in), b (out,)."""
    B, F = x.shape

    if B <= tile_b:
        tile_b = B                                  # single exact block, no padding
    else:
        tile_b = max(128, (tile_b // 128) * 128)    # lane-dense output blocks
    n_blocks = pl.cdiv(B, tile_b)                   # ragged tail masked by Pallas

    # Biases as (out, 1) columns so they broadcast along the lane (batch) axis.
    b1c = b1.reshape(-1, 1)
    b2c = b2.reshape(-1, 1)
    b3c = b3.reshape(-1, 1)

    const = lambda a: pl.BlockSpec(a.shape, lambda i: (0, 0))   # VMEM-resident

    out = pl.pallas_call(
        dnn_kernel,
        out_shape=jax.ShapeDtypeStruct((1, B), jnp.float32),
        grid=(n_blocks,),
        in_specs=[
            pl.BlockSpec((tile_b, F), lambda i: (i, 0)),        # streamed x tile (f32)
            const(w1), const(b1c),
            const(w2), const(b2c),
            const(w3), const(b3c),
        ],
        out_specs=pl.BlockSpec((1, tile_b), lambda i: (0, i)),  # lane-dense output row
        compiler_params=pltpu.CompilerParams(
            dimension_semantics=("parallel",),
            vmem_limit_bytes=48 * 1024 * 1024,
        ),
    )(x, w1, b1c, w2, b2c, w3, b3c)

    return out.reshape(B, 1)


def init_linear_params(key, fan_in, fan_out):
    """torch.nn.Linear default init: U(-1/sqrt(fan_in), 1/sqrt(fan_in)), w (out, in)."""
    k_w, k_b = jax.random.split(key)
    bound = 1.0 / math.sqrt(fan_in)
    w = jax.random.uniform(k_w, (fan_out, fan_in), jnp.float32, -bound, bound)
    b = jax.random.uniform(k_b, (fan_out,), jnp.float32, -bound, bound)
    return w, b


def reference_forward(x, w1, b1, w2, b2, w3, b3):
    hi = jax.lax.Precision.HIGHEST
    h1 = jax.nn.relu(jnp.dot(x, w1.T, precision=hi) + b1)
    h2 = jax.nn.relu(jnp.dot(h1, w2.T, precision=hi) + b2)
    return jax.nn.sigmoid(jnp.dot(h2, w3.T, precision=hi) + b3)


if __name__ == "__main__":
    # X_data_one_hot.shape[1] is data-dependent (pandas one-hot of a CSV); use
    # a small synthetic feature count consistent with the tabular input.
    # TODO(synk): pandas/CSV preprocessing has no Pallas equivalent; inputs are synthetic.
    IN_FEATURES = 32
    BATCH = 512

    key = jax.random.PRNGKey(0)
    kx, k1, k2, k3 = jax.random.split(key, 4)

    x = jax.random.normal(kx, (BATCH, IN_FEATURES), jnp.float32)
    w1, b1 = init_linear_params(k1, IN_FEATURES, 15)
    w2, b2 = init_linear_params(k2, 15, 7)
    w3, b3 = init_linear_params(k3, 7, 1)

    out = dnn_forward(x, w1, b1, w2, b2, w3, b3)
    out = jax.block_until_ready(out)

    ref = reference_forward(x, w1, b1, w2, b2, w3, b3)
    assert out.shape == (BATCH, 1), out.shape
    err = float(jnp.max(jnp.abs(out - ref)))
    assert err < 5e-4, err

    print("KERNEL_OK")
</pallas_src>

<mosaic_0001>
module attributes {stable_mosaic.version = 11 : i64} {
  func.func @dnn_kernel(%arg0: i32, %arg1: memref<512x32xf32, #tpu.memory_space<vmem>>, %arg2: memref<15x32xf32, #tpu.memory_space<vmem>>, %arg3: memref<15x1xf32, #tpu.memory_space<vmem>>, %arg4: memref<7x15xf32, #tpu.memory_space<vmem>>, %arg5: memref<7x1xf32, #tpu.memory_space<vmem>>, %arg6: memref<1x7xf32, #tpu.memory_space<vmem>>, %arg7: memref<1x1xf32, #tpu.memory_space<vmem>>, %arg8: memref<1x512xf32, #tpu.memory_space<vmem>>) attributes {dimension_semantics = [#tpu.dimension_semantics<parallel>], iteration_bounds = array<i64: 1>, scalar_prefetch = 0 : i64, scratch_operands = 0 : i64, tpu.core_type = #tpu.core_type<tc>, window_params = [{transform_indices = @transform_0, window_bounds = array<i64: 512, 32>}, {pipeline_mode = #tpu.pipeline_mode<synchronous>, transform_indices = @transform_1, window_bounds = array<i64: 15, 32>}, {pipeline_mode = #tpu.pipeline_mode<synchronous>, transform_indices = @transform_2, window_bounds = array<i64: 15, 1>}, {pipeline_mode = #tpu.pipeline_mode<synchronous>, transform_indices = @transform_3, window_bounds = array<i64: 7, 15>}, {pipeline_mode = #tpu.pipeline_mode<synchronous>, transform_indices = @transform_4, window_bounds = array<i64: 7, 1>}, {pipeline_mode = #tpu.pipeline_mode<synchronous>, transform_indices = @transform_5, window_bounds = array<i64: 1, 7>}, {pipeline_mode = #tpu.pipeline_mode<synchronous>, transform_indices = @transform_6, window_bounds = array<i64: 1, 1>}, {transform_indices = @transform_7, window_bounds = array<i64: 1, 512>}]} {
    %c0 = arith.constant 0 : index
    %c0_0 = arith.constant 0 : index
    %0 = vector.load %arg1[%c0, %c0_0] : memref<512x32xf32, #tpu.memory_space<vmem>>, vector<512x32xf32>
    %c0_1 = arith.constant 0 : index
    %c0_2 = arith.constant 0 : index
    %1 = vector.load %arg2[%c0_1, %c0_2] : memref<15x32xf32, #tpu.memory_space<vmem>>, vector<15x32xf32>
    %cst = arith.constant dense<0.000000e+00> : vector<15x512xf32>
    %2 = tpu.matmul %1, %0, %cst {dimension_numbers = #tpu.dot_dimension_numbers<[1], [1], [0], [0], [0, 0, 1, 0], [], []>} : vector<15x32xf32>, vector<512x32xf32>, vector<15x512xf32> -> vector<15x512xf32>
    %c0_3 = arith.constant 0 : index
    %c0_4 = arith.constant 0 : index
    %3 = vector.load %arg3[%c0_3, %c0_4] : memref<15x1xf32, #tpu.memory_space<vmem>>, vector<15x1xf32>
    %4 = vector.broadcast %3 : vector<15x1xf32> to vector<15x512xf32>
    %5 = arith.addf %2, %4 : vector<15x512xf32>
    %cst_5 = arith.constant 0.000000e+00 : f32
    %6 = vector.broadcast %cst_5 : f32 to vector<15x512xf32>
    %7 = arith.maximumf %5, %6 : vector<15x512xf32>
    %c0_6 = arith.constant 0 : index
    %c0_7 = arith.constant 0 : index
    %8 = vector.load %arg4[%c0_6, %c0_7] : memref<7x15xf32, #tpu.memory_space<vmem>>, vector<7x15xf32>
    %cst_8 = arith.constant dense<0.000000e+00> : vector<7x512xf32>
    %9 = tpu.matmul %8, %7, %cst_8 {dimension_numbers = #tpu.dot_dimension_numbers<[1], [0], [0], [1], [0, 0, 1, 1], [], []>} : vector<7x15xf32>, vector<15x512xf32>, vector<7x512xf32> -> vector<7x512xf32>
    %c0_9 = arith.constant 0 : index
    %c0_10 = arith.constant 0 : index
    %10 = vector.load %arg5[%c0_9, %c0_10] : memref<7x1xf32, #tpu.memory_space<vmem>>, vector<7x1xf32>
    %11 = vector.broadcast %10 : vector<7x1xf32> to vector<7x512xf32>
    %12 = arith.addf %9, %11 : vector<7x512xf32>
    %cst_11 = arith.constant 0.000000e+00 : f32
    %13 = vector.broadcast %cst_11 : f32 to vector<7x512xf32>
    %14 = arith.maximumf %12, %13 : vector<7x512xf32>
    %c0_12 = arith.constant 0 : index
    %c0_13 = arith.constant 0 : index
    %15 = vector.load %arg6[%c0_12, %c0_13] : memref<1x7xf32, #tpu.memory_space<vmem>>, vector<1x7xf32>
    %cst_14 = arith.constant dense<0.000000e+00> : vector<1x512xf32>
    %16 = tpu.matmul %15, %14, %cst_14 {dimension_numbers = #tpu.dot_dimension_numbers<[1], [0], [0], [1], [0, 0, 1, 1], [], []>} : vector<1x7xf32>, vector<7x512xf32>, vector<1x512xf32> -> vector<1x512xf32>
    %c0_15 = arith.constant 0 : index
    %c0_16 = arith.constant 0 : index
    %17 = vector.load %arg7[%c0_15, %c0_16] : memref<1x1xf32, #tpu.memory_space<vmem>>, vector<1x1xf32>
    %18 = vector.broadcast %17 : vector<1x1xf32> to vector<1x512xf32>
    %19 = arith.addf %16, %18 : vector<1x512xf32>
    %cst_17 = arith.constant 5.000000e-01 : f32
    %20 = vector.broadcast %cst_17 : f32 to vector<1x512xf32>
    %21 = arith.mulf %20, %19 : vector<1x512xf32>
    %22 = math.tanh %21 : vector<1x512xf32>
    %cst_18 = arith.constant 1.000000e+00 : f32
    %23 = vector.broadcast %cst_18 : f32 to vector<1x512xf32>
    %24 = arith.addf %22, %23 : vector<1x512xf32>
    %cst_19 = arith.constant 5.000000e-01 : f32
    %25 = vector.broadcast %cst_19 : f32 to vector<1x512xf32>
    %26 = arith.mulf %25, %24 : vector<1x512xf32>
    %c0_20 = arith.constant 0 : index
    %c0_21 = arith.constant 0 : index
    %27 = vector.load %arg8[%c0_20, %c0_21] : memref<1x512xf32, #tpu.memory_space<vmem>>, vector<1x512xf32>
    tpu.vector_store %arg8[%c0_20, %c0_21], %26 {strides = array<i32>} : memref<1x512xf32, #tpu.memory_space<vmem>>, vector<1x512xf32>,
    return
  }
  func.func @transform_0(%arg0: i32) -> (i32, i32) {
    %c0_i32 = arith.constant 0 : i32
    %c0_i32_0 = arith.constant 0 : i32
    return %arg0, %c0_i32 : i32, i32
  }
  func.func @transform_1(%arg0: i32) -> (i32, i32) {
    %c0_i32 = arith.constant 0 : i32
    %c0_i32_0 = arith.constant 0 : i32
    %c0_i32_1 = arith.constant 0 : i32
    return %c0_i32, %c0_i32_0 : i32, i32
  }
  func.func @transform_2(%arg0: i32) -> (i32, i32) {
    %c0_i32 = arith.constant 0 : i32
    %c0_i32_0 = arith.constant 0 : i32
    %c0_i32_1 = arith.constant 0 : i32
    return %c0_i32, %c0_i32_0 : i32, i32
  }
  func.func @transform_3(%arg0: i32) -> (i32, i32) {
    %c0_i32 = arith.constant 0 : i32
    %c0_i32_0 = arith.constant 0 : i32
    %c0_i32_1 = arith.constant 0 : i32
    return %c0_i32, %c0_i32_0 : i32, i32
  }
  func.func @transform_4(%arg0: i32) -> (i32, i32) {
    %c0_i32 = arith.constant 0 : i32
    %c0_i32_0 = arith.constant 0 : i32
    %c0_i32_1 = arith.constant 0 : i32
    return %c0_i32, %c0_i32_0 : i32, i32
  }
  func.func @transform_5(%arg0: i32) -> (i32, i32) {
    %c0_i32 = arith.constant 0 : i32
    %c0_i32_0 = arith.constant 0 : i32
    %c0_i32_1 = arith.constant 0 : i32
    return %c0_i32, %c0_i32_0 : i32, i32
  }
  func.func @transform_6(%arg0: i32) -> (i32, i32) {
    %c0_i32 = arith.constant 0 : i32
    %c0_i32_0 = arith.constant 0 : i32
    %c0_i32_1 = arith.constant 0 : i32
    return %c0_i32, %c0_i32_0 : i32, i32
  }
  func.func @transform_7(%arg0: i32) -> (i32, i32) {
    %c0_i32 = arith.constant 0 : i32
    %c0_i32_0 = arith.constant 0 : i32
    return %c0_i32, %arg0 : i32, i32
  }
}

</mosaic_0001>

<bundles_post_ra>
// kernel: dnn_forward.1
= control target key start
LH: loop header
LB: loop body
LE: loop exit
PB: predicated region body
PF: predicated region fallthrough
CT: control target
= control target key end

     0   :  { %s1532_s0 = inlined_call_operand.vmem [shape: f32[512,32], index: 0, kind: input, shape index: {}]   ;;  %s1533_s1 = inlined_call_operand.vmem [shape: f32[15,32], index: 1, kind: input, shape index: {}]   ;;  %s1534_s2 = inlined_call_operand.vmem [shape: f32[15,1], index: 2, kind: input, shape index: {}]   ;;  %s1535_s3 = inlined_call_operand.vmem [shape: f32[7,15], index: 3, kind: input, shape index: {}]   ;;  %s1536_s4 = inlined_call_operand.vmem [shape: f32[7,1], index: 4, kind: input, shape index: {}]   ;;  %s1537_s5 = inlined_call_operand.vmem [shape: f32[1,7], index: 5, kind: input, shape index: {}]   ;;  %s1538_s6 = inlined_call_operand.<no memory space> [shape: f32[1,1], index: 6, kind: input, shape index: {}]   ;;  %s1539_s7 = inlined_call_operand.hbm [shape: f32[1,512], index: 7, kind: output, shape index: {}]  }
   0x1   :  { %v12_v0 = vstv %s1538_s6 }
   0x2   :  { %13 = vst [vmem:[#allocation2] sm:$0x1] %v12_v0 }
   0x3   :  { %v45_v1 = vld [vmem:[%s1532_s0 + $0x80] sm:$0xff]  ;;  %v46_v2 = vld [vmem:[%s1532_s0 + $0x88] sm:$0xff]  ;;  %vm107_vm0 = vcmask 261120   ;;  %v1170_v8 = vmov 0   ;;  %v47_v15 = vld [vmem:[%s1532_s0 + $0x90] sm:$0xff] }
   0x4   :  { %v77_v3 = vld [vmem:[%s1532_s0 + $0x180] sm:$0xff]  ;;  %v1023_v4 = vpack.c.bf16 %v46_v2, %v45_v1  ;;  %vm1229_vm1 = vmpackc.low %vm107_vm0, %vm107_vm0  ;;  %v78_v6 = vld [vmem:[%s1532_s0 + $0x188] sm:$0xff]  ;;  %1136 = vset.pattern.permute.xlu0 %v1170_v8  ;;  %1137 = vset.pattern.permute.xlu1 %v1170_v8 }
   0x5   :  { %v29_v7 = vld [vmem:[%s1532_s0] sm:$0xff]  ;;  %v1071_v9 = vpack.c.bf16 %v78_v6, %v77_v3  ;;  %v30_v10 = vld [vmem:[%s1532_s0 + $0x8] sm:$0xff]  ;;  %v48_v16 = vld [vmem:[%s1532_s0 + $0x98] sm:$0xff] }
   0x6   :  { %v61_v11 = vld [vmem:[%s1532_s0 + $0x100] sm:$0xff]  ;;  %v62_v12 = vld [vmem:[%s1532_s0 + $0x108] sm:$0xff]  ;;  %1025 = vmatprep.subr.msk.bf16.mxu0 %vm1229_vm1, %v1023_v4  ;;  %v1026_v13 = vpack.c.bf16 %v30_v10, %v29_v7  ;;  %v79_v17 = vld [vmem:[%s1532_s0 + $0x190] sm:$0xff]  ;;  %v1029_v18 = vpack.c.bf16 %v48_v16, %v47_v15 }
   0x7   :  { %v1074_v14 = vpack.c.bf16 %v62_v12, %v61_v11  ;;  %1073 = vmatprep.subr.msk.bf16.mxu1 %vm1229_vm1, %v1071_v9  ;;  %v80_v19 = vld [vmem:[%s1532_s0 + $0x198] sm:$0xff]  ;;  %v31_v21 = vld [vmem:[%s1532_s0 + $0x10] sm:$0xff]  ;;  %v49_v25 = vld [vmem:[%s1532_s0 + $0xa0] sm:$0xff] }
   0x8   :  { %1028 = vmatpush3.bf16.xpose.msk.msra.mxu0 %vm1229_vm1, %v1026_v13  ;;  %v1077_v20 = vpack.c.bf16 %v80_v19, %v79_v17  ;;  %v32_v22 = vld [vmem:[%s1532_s0 + $0x18] sm:$0xff]  ;;  %v63_v23 = vld [vmem:[%s1532_s0 + $0x110] sm:$0xff]  ;;  %v50_v26 = vld [vmem:[%s1532_s0 + $0xa8] sm:$0xff] }
   0x9   :  { %1076 = vmatpush3.bf16.xpose.msk.msra.mxu1 %vm1229_vm1, %v1074_v14  ;;  %1031 = vmatprep.subr.msk.bf16.mxu0 %vm1229_vm1, %v1029_v18  ;;  %v64_v24 = vld [vmem:[%s1532_s0 + $0x118] sm:$0xff]  ;;  %v81_v27 = vld [vmem:[%s1532_s0 + $0x1a0] sm:$0xff]  ;;  %v82_v28 = vld [vmem:[%s1532_s0 + $0x1a8] sm:$0xff]  ;;  %v1032_v29 = vpack.c.bf16 %v32_v22, %v31_v21  ;;  %v1035_v31 = vpack.c.bf16 %v50_v26, %v49_v25 }
   0xa   :  { %1079 = vmatprep.subr.msk.bf16.mxu1 %vm1229_vm1, %v1077_v20  ;;  %v1080_v30 = vpack.c.bf16 %v64_v24, %v63_v23  ;;  %v1083_v32 = vpack.c.bf16 %v82_v28, %v81_v27  ;;  %v33_v33 = vld [vmem:[%s1532_s0 + $0x20] sm:$0xff]  ;;  %v34_v34 = vld [vmem:[%s1532_s0 + $0x28] sm:$0xff]  ;;  %v51_v37 = vld [vmem:[%s1532_s0 + $0xb0] sm:$0xff] }
   0xb   :  { %v65_v35 = vld [vmem:[%s1532_s0 + $0x120] sm:$0xff]  ;;  %v66_v36 = vld [vmem:[%s1532_s0 + $0x128] sm:$0xff]  ;;  %v52_v38 = vld [vmem:[%s1532_s0 + $0xb8] sm:$0xff]  ;;  %v1038_v41 = vpack.c.bf16 %v34_v34, %v33_v33 }
   0xc   :  { %v83_v39 = vld [vmem:[%s1532_s0 + $0x1b0] sm:$0xff]  ;;  %v84_v40 = vld [vmem:[%s1532_s0 + $0x1b8] sm:$0xff]  ;;  %v1086_v42 = vpack.c.bf16 %v66_v36, %v65_v35  ;;  %v1041_v43 = vpack.c.bf16 %v52_v38, %v51_v37  ;;  %v1347_v49 = vld [vmem:[%s1533_s1] sm:$0xff] }
   0xd   :  { %v1089_v44 = vpack.c.bf16 %v84_v40, %v83_v39  ;;  %v35_v45 = vld [vmem:[%s1532_s0 + $0x30] sm:$0xff]  ;;  %v36_v46 = vld [vmem:[%s1532_s0 + $0x38] sm:$0xff]  ;;  %v53_v50 = vld [vmem:[%s1532_s0 + $0xc0] sm:$0xff]  ;;  %983 = vmatprep.mubr.msk.f32.mxu0 %vm107_vm0, %v1347_v49  ;;  %1019 = vmatprep.mubr.msk.f32.mxu1 %vm107_vm0, %v1347_v49 }
   0xe   :  { %v67_v47 = vld [vmem:[%s1532_s0 + $0x130] sm:$0xff]  ;;  %v68_v48 = vld [vmem:[%s1532_s0 + $0x138] sm:$0xff]  ;;  %v54_v51 = vld [vmem:[%s1532_s0 + $0xc8] sm:$0xff] }
   0xf   :  { %v95_v52 = vld [vmem:[%s1534_s2] sm:$0xff]  ;;  %v86_v54 = vld [vmem:[%s1532_s0 + $0x1c8] sm:$0xff] }
  0x10   :  { %1034 = vmatpush3.bf16.xpose.msk.msra.mxu0 %vm1229_vm1, %v1032_v29  ;;  %v85_v53 = vld [vmem:[%s1532_s0 + $0x1c0] sm:$0xff] }
  0x11   :  { %1082 = vmatpush3.bf16.xpose.msk.msra.mxu1 %vm1229_vm1, %v1080_v30  ;;  %1037 = vmatprep.subr.msk.bf16.mxu0 %vm1229_vm1, %v1035_v31 }
  0x12   :  { %1085 = vmatprep.subr.msk.bf16.mxu1 %vm1229_vm1, %v1083_v32 }
  0x18   :  { %1040 = vmatpush3.bf16.xpose.msk.msra.mxu0 %vm1229_vm1, %v1038_v41 }
  0x19   :  { %1088 = vmatpush3.bf16.xpose.msk.msra.mxu1 %vm1229_vm1, %v1086_v42  ;;  %1043 = vmatprep.subr.msk.bf16.mxu0 %vm1229_vm1, %v1041_v43 }
  0x1a   :  { %1091 = vmatprep.subr.msk.bf16.mxu1 %vm1229_vm1, %v1089_v44 }
  0x1b   :  { %14 = vsyncpa [#allocation4], 0  ;;  %99 = vperm.xlu0 %1136, %v95_v52   ;;  %v1044_v55 = vpack.c.bf16 %v36_v46, %v35_v45  ;;  %v1092_v56 = vpack.c.bf16 %v68_v48, %v67_v47  ;;  %v96_v57 = vld [vmem:[%s1534_s2 + $0x8] sm:$0x7f]  ;;  %v1047_v58 = vpack.c.bf16 %v54_v51, %v53_v50  ;;  %v1095_v59 = vpack.c.bf16 %v86_v54, %v85_v53  ;;  %v37_v60 = vld [vmem:[%s1532_s0 + $0x40] sm:$0xff] }
  0x1c   :  { %v38_v61 = vld [vmem:[%s1532_s0 + $0x48] sm:$0xff]  ;;  %v69_v62 = vld [vmem:[%s1532_s0 + $0x140] sm:$0xff]  ;;  %v55_v0 = vld [vmem:[%s1532_s0 + $0xd0] sm:$0xff]  ;;  %v1171_v5 = vmov 0.0   ;;  %vm479_vm2 = vcmask 1046528   ;;  %vm1172_vm3 = vmmov 1  }
  0x1d   :  { %v70_v63 = vld [vmem:[%s1532_s0 + $0x148] sm:$0xff]  ;;  %v56_v1 = vld [vmem:[%s1532_s0 + $0xd8] sm:$0xff]  ;;  %v87_v2 = vld [vmem:[%s1532_s0 + $0x1d0] sm:$0xff]  ;;  %v1050_v4 = vpack.c.bf16 %v38_v61, %v37_v60  ;;  %vm475_vm5 = vcmask 121856   ;;  %vm649_vm6 = vcmask 56320  }
  0x1e   :  { %v88_v3 = vld [vmem:[%s1532_s0 + $0x1d8] sm:$0xff]  ;;  %v1098_v6 = vpack.c.bf16 %v70_v63, %v69_v62  ;;  %v1053_v7 = vpack.c.bf16 %v56_v1, %v55_v0  ;;  %v39_v9 = vld [vmem:[%s1532_s0 + $0x50] sm:$0xff]  ;;  %v57_v13 = vld [vmem:[%s1532_s0 + $0xe0] sm:$0xff] }
  0x1f   :  { %104 = vperm.xlu0 %1136, %v96_v57   ;;  %v1101_v8 = vpack.c.bf16 %v88_v3, %v87_v2  ;;  %v40_v10 = vld [vmem:[%s1532_s0 + $0x58] sm:$0xff]  ;;  %v71_v11 = vld [vmem:[%s1532_s0 + $0x150] sm:$0xff]  ;;  %v58_v14 = vld [vmem:[%s1532_s0 + $0xe8] sm:$0xff] }
  0x20   :  { %1046 = vmatpush3.bf16.xpose.msk.msra.mxu0 %vm1229_vm1, %v1044_v55  ;;  %v72_v12 = vld [vmem:[%s1532_s0 + $0x158] sm:$0xff]  ;;  %v89_v15 = vld [vmem:[%s1532_s0 + $0x1e0] sm:$0xff]  ;;  %v90_v16 = vld [vmem:[%s1532_s0 + $0x1e8] sm:$0xff]  ;;  %v1056_v17 = vpack.c.bf16 %v40_v10, %v39_v9  ;;  %v1059_v19 = vpack.c.bf16 %v58_v14, %v57_v13 }
  0x21   :  { %1094 = vmatpush3.bf16.xpose.msk.msra.mxu1 %vm1229_vm1, %v1092_v56  ;;  %1049 = vmatprep.subr.msk.bf16.mxu0 %vm1229_vm1, %v1047_v58  ;;  %v1104_v18 = vpack.c.bf16 %v72_v12, %v71_v11  ;;  %v1107_v20 = vpack.c.bf16 %v90_v16, %v89_v15  ;;  %v41_v21 = vld [vmem:[%s1532_s0 + $0x60] sm:$0xff]  ;;  %v42_v22 = vld [vmem:[%s1532_s0 + $0x68] sm:$0xff]  ;;  %v59_v25 = vld [vmem:[%s1532_s0 + $0xf0] sm:$0xff] }
  0x22   :  { %1097 = vmatprep.subr.msk.bf16.mxu1 %vm1229_vm1, %v1095_v59  ;;  %v73_v23 = vld [vmem:[%s1532_s0 + $0x160] sm:$0xff]  ;;  %v74_v24 = vld [vmem:[%s1532_s0 + $0x168] sm:$0xff]  ;;  %v60_v26 = vld [vmem:[%s1532_s0 + $0xf8] sm:$0xff]  ;;  %v1062_v29 = vpack.c.bf16 %v42_v22, %v41_v21 }
  0x23   :  { %v91_v27 = vld [vmem:[%s1532_s0 + $0x1f0] sm:$0xff]  ;;  %v92_v28 = vld [vmem:[%s1532_s0 + $0x1f8] sm:$0xff]  ;;  %v1110_v30 = vpack.c.bf16 %v74_v24, %v73_v23  ;;  %v1065_v31 = vpack.c.bf16 %v60_v26, %v59_v25  ;;  %v94_v39 = vld [vmem:[%s1533_s1 + $0x8] sm:$0x7f]  ;;  %v645_v24 = vlaneseq }
  0x24   :  { %v1113_v32 = vpack.c.bf16 %v92_v28, %v91_v27  ;;  %v43_v33 = vld [vmem:[%s1532_s0 + $0x70] sm:$0xff]  ;;  %v44_v34 = vld [vmem:[%s1532_s0 + $0x78] sm:$0xff]  ;;  %v469_v40 = vld [vmem:[%s1536_s4] sm:$0x7f] }
  0x25   :  { %v75_v35 = vld [vmem:[%s1532_s0 + $0x170] sm:$0xff]  ;;  %v76_v36 = vld [vmem:[%s1532_s0 + $0x178] sm:$0xff]  ;;  %v1068_v37 = vpack.c.bf16 %v44_v34, %v43_v33  ;;  %472 = vperm.xlu1 %1137, %v469_v40   ;;  %v639_v41 = vld [vmem:[#allocation2] sm:$0x1]  ;;  %v646_v25 = vshrl.u32 %v645_v24, 7  ;;  %vm854_vm7 = vcmp.lt.s32.totalorder %v645_v24, 512 }
  0x26   :  { %v1116_v38 = vpack.c.bf16 %v76_v36, %v75_v35  ;;  %vm1120_vm4 = vmpackc.low %vm479_vm2, %vm1172_vm3  ;;  %v468_v9 = vld [vmem:[%s1535_s3] sm:$0x7f]  ;;  %v1173_v40 = vmov 1966171168  }
  0x27   :  { %v638_v23 = vld [vmem:[%s1537_s5] sm:$0x1]  ;;  %v647_v26 = vsub.s32 0, %v646_v25  ;;  %s1174_s5 = smov [#allocation3]  }
  0x28   :  { %1052 = vmatpush3.bf16.xpose.msk.msra.mxu0 %vm1229_vm1, %v1050_v4  ;;  %s863_s17 = sshll.u32 %s1174_s5, 4  ;;  %s864_s17 = int_to_ptr.vmem [resolvable:$true] %s863_s17 }
  0x29   :  { %1100 = vmatpush3.bf16.xpose.msk.msra.mxu1 %vm1229_vm1, %v1098_v6  ;;  %1055 = vmatprep.subr.msk.bf16.mxu0 %vm1229_vm1, %v1053_v7  ;;  %s1146_s18 = scalar_lea.vmem %s864_s17, 64  ;;  %p1151_p1 = scmp.lt.s32.totalorder %s864_s17, %s864_s17 }
  0x2a   :  { %1103 = vmatprep.subr.msk.bf16.mxu1 %vm1229_vm1, %v1101_v8  ;;  %642 = vperm.xlu1 %1137, %v639_v41   ;;  %v830_v41 = vunpack.c.l.s4 %v1173_v40  ;;  %p1147_p0 = scmp.ne.s32.totalorder %s864_s17, %s1146_s18  ;;  %p1152_p2 = scmp.lt.s32.totalorder %s1146_s18, %s1146_s18 }
  0x2c   :  { %p1153_p3 = por %p1152_p2, %p1151_p1 }
  0x2e   :  { %p1154_p4 = pnand %p1153_p3, %p1147_p0 }
  0x30   :  { %1058 = vmatpush3.bf16.xpose.msk.msra.mxu0 %vm1229_vm1, %v1056_v17 }
  0x31   :  { %1106 = vmatpush3.bf16.xpose.msk.msra.mxu1 %vm1229_vm1, %v1104_v18  ;;  %1061 = vmatprep.subr.msk.bf16.mxu0 %vm1229_vm1, %v1059_v19 }
  0x32   :  { %1109 = vmatprep.subr.msk.bf16.mxu1 %vm1229_vm1, %v1107_v20 }
  0x38   :  { %1064 = vmatpush3.bf16.xpose.msk.msra.mxu0 %vm1229_vm1, %v1062_v29 }
  0x39   :  { %1112 = vmatpush3.bf16.xpose.msk.msra.mxu1 %vm1229_vm1, %v1110_v30  ;;  %1067 = vmatprep.subr.msk.bf16.mxu0 %vm1229_vm1, %v1065_v31 }
  0x3a   :  { %1115 = vmatprep.subr.msk.bf16.mxu1 %vm1229_vm1, %v1113_v32 }
  0x40   :  { %1070 = vmatpush3.bf16.xpose.msk.msra.mxu0 %vm1229_vm1, %v1068_v37 }
  0x41   :  { %1118 = vmatpush3.bf16.xpose.msk.msra.mxu1 %vm1229_vm1, %v1116_v38 }
  0x47   :  { %984 = vmatmul.mubr.msk.f32.vlgmr.msra.gmra.mrb[0].mxu0 %vm107_vm0, %v1347_v49 }
  0x48   :  { %1020 = vmatmul.mubr.msk.f32.vlgmr.msra.gmra.mrb[0].mxu1 %vm107_vm0, %v1347_v49  ;;  %985 = vmatprep.mubr.msk.f32.mxu0 %vm107_vm0, %v94_v39 }
  0x49   :  { %1021 = vmatprep.mubr.msk.f32.mxu1 %vm107_vm0, %v94_v39 }
  0x4b   :  { %986 = vmatmul.mubr.msk.f32.gmra.mrb[2].mxu0 %vm107_vm0, %v94_v39 }
  0x4c   :  { %1022 = vmatmul.mubr.msk.f32.gmra.mrb[2].mxu1 %vm107_vm0, %v94_v39  ;;  %556 = vmatprep.mubr.f32.mxu0 %v1171_v5 }
  0x4d   :  { %627 = vmatprep.mubr.f32.mxu1 %v1171_v5 }
  0x9a   :  { %v100_v42 = vpop.permute.xlu0 %99 }
  0x9e   :  { %v105_v49 = vpop.permute.xlu0 %104 }
  0xa4   :  { %v473_v10 = vpop.permute.xlu1 %472 }
  0xa9   :  { %v643_v27 = vpop.permute.xlu1 %642 }
  0xaa   :  { %v648_v28 = vrot.slane %v643_v27, %v647_v26 }
 0x11a   :  { %v372_v43 = vpop.f32.mrb[0].mxu0 }
 0x11b   :  { %v449_v44 = vpop.f32.mrb[0].mxu1  ;;  %v374_v45 = vpop.f32.mrb[1].mxu0  ;;  %v373_v47 = vadd.f32 %v372_v43, %v100_v42 }
 0x11c   :  { %v451_v46 = vpop.f32.mrb[1].mxu1  ;;  %v450_v48 = vadd.f32 %v449_v44, %v100_v42  ;;  %v375_v50 = vadd.f32 %v374_v45, %v100_v42  ;;  %v831_v44 = vunpack.c.0.s8 %v830_v41 }
 0x11d   :  { %v452_v51 = vadd.f32 %v451_v46, %v100_v42  ;;  %v460_v60 = vmax.f32 %v373_v47, 0.0 }
 0x11e   :  { %v378_v52 = vpop.f32.mrb[2].mxu0  ;;  %v462_v61 = vmax.f32 %v450_v48, 0.0  ;;  %v461_v0 = vmax.f32 %v375_v50, 0.0 }
 0x11f   :  { %v455_v53 = vpop.f32.mrb[2].mxu1  ;;  %v379_v54 = vadd.f32 %v378_v52, %v105_v49  ;;  %v380_v56 = vpop.f32.mrb[3].mxu0  ;;  %v463_v1 = vmax.f32 %v452_v51, 0.0 }
 0x120   :  { %v456_v55 = vadd.f32 %v455_v53, %v105_v49  ;;  %v457_v57 = vpop.f32.mrb[3].mxu1  ;;  %v381_v58 = vadd.f32 %v380_v56, %v105_v49  ;;  %v834_v53 = vsub.s32 %v831_v44, %v646_v25 }
 0x121   :  { %v458_v59 = vadd.f32 %v457_v57, %v105_v49  ;;  %v464_v62 = vmax.f32 %v379_v54, 0.0 }
 0x122   :  { %v466_v63 = vmax.f32 %v456_v55, 0.0  ;;  %v465_v2 = vmax.f32 %v381_v58, 0.0 }
 0x123   :  { %v467_v3 = vmax.f32 %v458_v59, 0.0  ;;  %v1122_v4 = vpack.c.bf16 %v464_v62, %v460_v60 }
 0x124   :  { %v1128_v6 = vpack.c.bf16 %v466_v63, %v462_v61  ;;  %v1119_v7 = vpack.c.bf16 %v465_v2, %v461_v0 }
 0x125   :  { %v1125_v8 = vpack.c.bf16 %v467_v3, %v463_v1 }
 0x126   :  { %1121 = vmatprep.subr.msk.bf16.mxu0 %vm1120_vm4, %v1119_v7 }
 0x127   :  { %1127 = vmatprep.subr.msk.bf16.mxu1 %vm1120_vm4, %v1125_v8  ;;  %1124 = vmatpush1.bf16.msk.msra.mxu0 %vm1120_vm4, %v1122_v4 }
 0x128   :  { %1130 = vmatpush1.bf16.msk.msra.mxu1 %vm1120_vm4, %v1128_v6 }
 0x12a   :  { %941 = vmatmul.mubr.msk.f32.vlgmr.msra.gmra.mrb[4].mxu0 %vm475_vm5, %v468_v9 }
 0x12b   :  { %944 = vmatmul.mubr.msk.f32.vlgmr.msra.gmra.mrb[4].mxu1 %vm475_vm5, %v468_v9  ;;  %729 = vmatprep.mubr.f32.mxu0 %v1171_v5 }
 0x12c   :  { %800 = vmatprep.mubr.f32.mxu1 %v1171_v5 }
 0x1fd   :  { %v558_v11 = vpop.f32.mrb[4].mxu0 }
 0x1fe   :  { %v629_v12 = vpop.f32.mrb[4].mxu1  ;;  %v559_v13 = vadd.f32 %v558_v11, %v473_v10  ;;  %v560_v15 = vpop.f32.mrb[5].mxu0 }
 0x1ff   :  { %v630_v14 = vadd.f32 %v629_v12, %v473_v10  ;;  %v631_v16 = vpop.f32.mrb[5].mxu1  ;;  %v561_v17 = vadd.f32 %v560_v15, %v473_v10 }
 0x200   :  { %v632_v18 = vadd.f32 %v631_v16, %v473_v10  ;;  %v634_v21 = vmax.f32 %v559_v13, 0.0 }
 0x201   :  { %v635_v19 = vmax.f32 %v561_v17, 0.0  ;;  %v636_v22 = vmax.f32 %v630_v14, 0.0 }
 0x202   :  { %v637_v20 = vmax.f32 %v632_v18, 0.0 }
 0x203   :  { %945 = vmatprep.subr.msk.mxu0 %vm479_vm2, %v635_v19 }
 0x204   :  { %948 = vmatprep.subr.msk.mxu1 %vm479_vm2, %v637_v20  ;;  %946 = vmatpush1.msk.msra.mxu0 %vm479_vm2, %v634_v21 }
 0x205   :  { %949 = vmatpush1.msk.msra.mxu1 %vm479_vm2, %v636_v22  ;;  %947 = vmatmul.mubr.msk.f32.vlgmr.msra.gmra.mrb[6].mxu0 %vm649_vm6, %v638_v23 }
 0x206   :  { %950 = vmatmul.mubr.msk.f32.vlgmr.msra.gmra.mrb[6].mxu1 %vm649_vm6, %v638_v23 }
 0x2d8   :  { %v731_v29 = vpop.f32.mrb[6].mxu0 }
 0x2d9   :  { %v802_v30 = vpop.f32.mrb[6].mxu1  ;;  %v732_v31 = vadd.f32 %v731_v29, %v648_v28  ;;  %v733_v33 = vpop.f32.mrb[7].mxu0 }
 0x2da   :  { %v803_v32 = vadd.f32 %v802_v30, %v648_v28  ;;  %v804_v34 = vpop.f32.mrb[7].mxu1  ;;  %v734_v35 = vadd.f32 %v733_v33, %v648_v28 }
 0x2db   :  { %v805_v36 = vadd.f32 %v804_v34, %v648_v28  ;;  %v807_v37 = vmul.f32 0.5, %v732_v31 }
 0x2dc   :  { %v809_v38 = vmul.f32 0.5, %v803_v32  ;;  %v808_v39 = vmul.f32 0.5, %v734_v35 }
 0x2dd   :  { %v810_v5 = vmul.f32 0.5, %v805_v36  ;;  %1138 = vtanh.f32 %v807_v37 }
 0x2de   :  { %1140 = vtanh.f32 %v809_v38 }
 0x2df   :  { %1142 = vtanh.f32 %v808_v39 }
 0x2e0   :  { %1144 = vtanh.f32 %v810_v5 }
 0x2e7   :  { %v1139_v42 = vpop.eup %1138 }
 0x2e8   :  { %v1141_v43 = vpop.eup %1140  ;;  %v815_v45 = vadd.f32 1.0, %v1139_v42 }
 0x2e9   :  { %v1143_v46 = vpop.eup %1142  ;;  %v817_v47 = vadd.f32 1.0, %v1141_v43 }
 0x2ea   :  { %v1145_v48 = vpop.eup %1144  ;;  %v819_v49 = vmul.f32 0.5, %v815_v45  ;;  %v816_v50 = vadd.f32 1.0, %v1143_v46 }
 0x2eb   :  { %v821_v51 = vmul.f32 0.5, %v817_v47  ;;  %v818_v52 = vadd.f32 1.0, %v1145_v48 }
 0x2ec   :  { %v820_v54 = vmul.f32 0.5, %v816_v50 }
 0x2ed   :  { %v822_v55 = vmul.f32 0.5, %v818_v52 }
 0x2ee   :  { %v827_v56 = vcombine.low %v819_v49, %v820_v54 }
 0x2ef   :  { %v828_v57 = vcombine.low %v821_v51, %v822_v55 }
 0x2f0   :  { %v835_v58 = vrot.slane %v827_v56, %v834_v53 }
 0x2f1   :  { %v842_v59 = vrot.slane %v828_v57, %v834_v53 }
 0x2f3   :  { %v843_v60 = vcombine.low %v835_v58, %v842_v59 }
 0x2f5   :  { %v850_v61 = vrot.slane %v843_v60, %v834_v53 }
 0x2f7   :  { %856 = vst.msk [vmem:[#allocation3] sm:$0xf] %vm854_vm7, %v850_v61 }
 0x2f8   :  { %1157 = shalt.err (!%p1154_p4)
}
 0x2f9   :  { %s1158_s21 = scalar_lea.hbm %s1539_s7, 64 }
 0x2fa   :  { %p1159_p5 = scmp.ne.s32.totalorder %s1539_s7, %s1158_s21  ;;  %p1162_p6 = scmp.lt.u32.totalorder %s1158_s21, %s1539_s7 }
 0x2fc   :  { %p1164_p7 = pnand %p1162_p6, %p1159_p5 }
 0x2fe   :  { %1167 = shalt.err (!%p1164_p7)
}
 0x2ff   :  { %866 = dma.vmem_to_hbm [thread:$0]  %s864_s17, 64, %s1539_s7, [#allocation4]  }
 0x300   :  { %1168 = dma.done.wait [#allocation4], 64  }
 0x301   :  { %1169 = vsyncadd [#allocation4], 4294967232 }
 0x302   :  { %870 = vsyncpa [#allocation4], 1 }

</bundles_post_ra>
